<compile_context>
chip_gen: v7x
topology: tpu7x:2x2x1
jax: 0.10.0
libtpu: 0.0.40
codegen_flags: <defaults>
</compile_context>

<pallas_src>
import jax
import jax.numpy as jnp
from jax.experimental import pallas as pl
from jax.experimental.pallas import tpu as pltpu

IN_FEATURES = 2137
H1 = 512
H2 = 128
OUT = 27
OUT_PAD = 128          # lane-dense output slab
BN_EPS = 1e-5
NEG_BIG = -1e30        # python float -> used only in wrapper-side padding


def _round_up(x, m):
    return (x + m - 1) // m * m


def style_classifier_kernel(
    x_ref,     # (TB, 2137)      f32
    w_ref,     # (2137, OUT_PAD) bf16  (fc1*bn1*fc2*fc3 collapsed, zero-padded cols)
    b_ref,     # (1, OUT_PAD)    f32   (padded lanes = -1e30 -> self-masking)
    out_ref,   # (TB, OUT_PAD)   f32   log-probs (only first OUT lanes meaningful)
):
    x = x_ref[...].astype(jnp.bfloat16)
    logits = jnp.dot(x, w_ref[...], preferred_element_type=jnp.float32)
    logits = logits + b_ref[...]          # padded lanes become -1e30

    # log_softmax over the lane axis; padded lanes contribute exp(-huge) ~ 0.
    m = jnp.max(logits, axis=-1, keepdims=True)
    shifted = logits - m
    lse = jnp.log(jnp.sum(jnp.exp(shifted), axis=-1, keepdims=True))
    out_ref[...] = (shifted - lse).astype(out_ref.dtype)


def fold_and_pad_params(p):
    """Fold BN into fc1, collapse fc1@fc2@fc3 in f32, pad lanes, cast once to bf16."""
    hi = jax.lax.Precision.HIGHEST
    scale = p["gamma1"] * jax.lax.rsqrt(p["rvar1"] + BN_EPS)         # (1, H1)
    w1_eff = p["w1"] * scale                                         # (2137, 512)
    b1_eff = (p["b1"] - p["rmean1"]) * scale + p["beta1"]            # (1, 512)

    w12 = jnp.dot(w1_eff, p["w2"], precision=hi)                     # (2137, 128)
    b12 = jnp.dot(b1_eff, p["w2"], precision=hi) + p["b2"]           # (1, 128)
    # dp2: Dropout(p=0.25) is identity in eval mode.
    w_all = jnp.dot(w12, p["w3"], precision=hi)                      # (2137, 27)
    b_all = jnp.dot(b12, p["w3"], precision=hi) + p["b3"]            # (1, 27)

    w_all = jnp.pad(w_all, ((0, 0), (0, OUT_PAD - OUT)))             # zero cols
    b_all = jnp.pad(b_all, ((0, 0), (0, OUT_PAD - OUT)),
                    constant_values=NEG_BIG)                         # mask baked in

    return {
        "w_all": w_all.astype(jnp.bfloat16),
        "b_all": b_all.astype(jnp.float32),
    }


def style_classifier(x, fp):
    """x: (B, 2137) f32, fp: folded params -> (B, 27) f32 log-probs."""
    B = x.shape[0]
    b8 = _round_up(max(B, 1), 8)
    # >=2 grid steps once the batch is big enough (megacore on v7x), capped so
    # double-buffered x tiles stay small; always a multiple of 8 sublanes.
    TB = min(512, _round_up(pl.cdiv(b8, 2), 8))
    grid = (pl.cdiv(B, TB),)

    const = lambda i: (0, 0)
    out = pl.pallas_call(
        style_classifier_kernel,
        out_shape=jax.ShapeDtypeStruct((B, OUT_PAD), jnp.float32),
        grid=grid,
        in_specs=[
            pl.BlockSpec((TB, IN_FEATURES), lambda i: (i, 0)),   # x tile (pipelined)
            pl.BlockSpec((IN_FEATURES, OUT_PAD), const),         # resident collapsed W
            pl.BlockSpec((1, OUT_PAD), const),
        ],
        out_specs=pl.BlockSpec((TB, OUT_PAD), lambda i: (i, 0)),
        compiler_params=pltpu.CompilerParams(
            dimension_semantics=("parallel",),
            vmem_limit_bytes=48 << 20,
        ),
    )(x, fp["w_all"], fp["b_all"])

    return out[:, :OUT]


def init_params(key):
    """Deterministic synthetic parameters with the shapes nn.Module implies."""
    k1, k2, k3, kb1, kb2, kb3, kg, kbt, km, kv = jax.random.split(key, 10)

    def linear_init(kw, kb, fan_in, fan_out):
        bound = 1.0 / jnp.sqrt(fan_in)
        # stored as (in, out) == transposed PyTorch weight
        w = jax.random.uniform(kw, (fan_in, fan_out), jnp.float32, -bound, bound)
        b = jax.random.uniform(kb, (1, fan_out), jnp.float32, -bound, bound)
        return w, b

    w1, b1 = linear_init(k1, kb1, IN_FEATURES, H1)
    w2, b2 = linear_init(k2, kb2, H1, H2)
    w3, b3 = linear_init(k3, kb3, H2, OUT)

    return {
        "w1": w1, "b1": b1,
        # non-trivial BN stats so the fold is actually exercised
        "gamma1": jax.random.uniform(kg, (1, H1), jnp.float32, 0.5, 1.5),
        "beta1": 0.1 * jax.random.normal(kbt, (1, H1), jnp.float32),
        "rmean1": 0.1 * jax.random.normal(km, (1, H1), jnp.float32),
        "rvar1": jax.random.uniform(kv, (1, H1), jnp.float32, 0.5, 1.5),
        "w2": w2, "b2": b2,
        "w3": w3, "b3": b3,
    }


def reference_forward_f32(x, p):
    """Pure-JAX f32 layer-by-layer reference (PyTorch eval-mode semantics)."""
    h1 = x @ p["w1"] + p["b1"]
    h1 = (h1 - p["rmean1"]) / jnp.sqrt(p["rvar1"] + BN_EPS) * p["gamma1"] + p["beta1"]
    h2 = h1 @ p["w2"] + p["b2"]
    logits = h2 @ p["w3"] + p["b3"]
    return jax.nn.log_softmax(logits, axis=-1)


def reference_forward_collapsed(x, fp):
    """Pure-JAX reference matching the kernel's collapsed bf16 matmul exactly."""
    logits = jnp.dot(x.astype(jnp.bfloat16), fp["w_all"],
                     preferred_element_type=jnp.float32) + fp["b_all"]
    return jax.nn.log_softmax(logits[:, :OUT], axis=-1)


if __name__ == "__main__":
    key = jax.random.PRNGKey(0)
    kx, kp = jax.random.split(key)

    B = 8
    x = jax.random.normal(kx, (B, IN_FEATURES), jnp.float32)
    params = init_params(kp)
    fp = fold_and_pad_params(params)

    out = style_classifier(x, fp)
    out = jax.block_until_ready(out)
    assert out.shape == (B, OUT), out.shape

    # Tight check against a reference that uses the same collapsed bf16 matmul.
    ref_c = reference_forward_collapsed(x, fp)
    assert jnp.allclose(out, ref_c, atol=2e-3, rtol=2e-3), float(
        jnp.max(jnp.abs(out - ref_c)))

    # Loose semantic check against the full-precision f32 layer-by-layer reference.
    ref_f32 = reference_forward_f32(x, params)
    assert jnp.allclose(out, ref_f32, atol=5e-2, rtol=5e-2), float(
        jnp.max(jnp.abs(out - ref_f32)))

    # log-softmax rows should sum (in prob space) to ~1
    assert jnp.allclose(jnp.sum(jnp.exp(out), axis=-1), 1.0, atol=1e-3)

    print("KERNEL_OK")
</pallas_src>

<mosaic_0001>
module attributes {stable_mosaic.version = 11 : i64} {
  func.func @style_classifier_kernel(%arg0: i32, %arg1: memref<8x2137xf32, #tpu.memory_space<vmem>>, %arg2: memref<2137x128xbf16, #tpu.memory_space<vmem>>, %arg3: memref<1x128xf32, #tpu.memory_space<vmem>>, %arg4: memref<8x128xf32, #tpu.memory_space<vmem>>) attributes {dimension_semantics = [#tpu.dimension_semantics<parallel>], iteration_bounds = array<i64: 1>, scalar_prefetch = 0 : i64, scratch_operands = 0 : i64, tpu.core_type = #tpu.core_type<tc>, window_params = [{transform_indices = @transform_0, window_bounds = array<i64: 8, 2137>}, {pipeline_mode = #tpu.pipeline_mode<synchronous>, transform_indices = @transform_1, window_bounds = array<i64: 2137, 128>}, {pipeline_mode = #tpu.pipeline_mode<synchronous>, transform_indices = @transform_2, window_bounds = array<i64: 1, 128>}, {transform_indices = @transform_3, window_bounds = array<i64: 8, 128>}]} {
    %c0 = arith.constant 0 : index
    %c0_0 = arith.constant 0 : index
    %0 = vector.load %arg1[%c0, %c0_0] : memref<8x2137xf32, #tpu.memory_space<vmem>>, vector<8x2137xf32>
    %1 = arith.truncf %0 : vector<8x2137xf32> to vector<8x2137xbf16>
    %c0_1 = arith.constant 0 : index
    %c0_2 = arith.constant 0 : index
    %2 = vector.load %arg2[%c0_1, %c0_2] : memref<2137x128xbf16, #tpu.memory_space<vmem>>, vector<2137x128xbf16>
    %cst = arith.constant dense<0.000000e+00> : vector<8x128xf32>
    %3 = tpu.matmul %1, %2, %cst {dimension_numbers = #tpu.dot_dimension_numbers<[1], [0], [0], [1], [0, 0, 1, 1], [], []>} : vector<8x2137xbf16>, vector<2137x128xbf16>, vector<8x128xf32> -> vector<8x128xf32>
    %c0_3 = arith.constant 0 : index
    %c0_4 = arith.constant 0 : index
    %4 = vector.load %arg3[%c0_3, %c0_4] : memref<1x128xf32, #tpu.memory_space<vmem>>, vector<1x128xf32>
    %5 = vector.broadcast %4 : vector<1x128xf32> to vector<8x128xf32>
    %6 = arith.addf %3, %5 : vector<8x128xf32>
    %cst_5 = arith.constant dense<0xFF800000> : vector<8xf32>
    %7 = vector.multi_reduction <maximumf>, %6, %cst_5 [1] : vector<8x128xf32> to vector<8xf32>
    %8 = vector.shape_cast %7 : vector<8xf32> to vector<8x1xf32>
    %9 = vector.broadcast %8 : vector<8x1xf32> to vector<8x128xf32>
    %10 = arith.subf %6, %9 : vector<8x128xf32>
    %11 = math.exp %10 : vector<8x128xf32>
    %cst_6 = arith.constant dense<0.000000e+00> : vector<8xf32>
    %12 = vector.multi_reduction <add>, %11, %cst_6 [1] : vector<8x128xf32> to vector<8xf32>
    %13 = vector.shape_cast %12 : vector<8xf32> to vector<8x1xf32>
    %14 = math.log %13 : vector<8x1xf32>
    %15 = vector.broadcast %14 : vector<8x1xf32> to vector<8x128xf32>
    %16 = arith.subf %10, %15 : vector<8x128xf32>
    %c0_7 = arith.constant 0 : index
    %c0_8 = arith.constant 0 : index
    %17 = vector.load %arg4[%c0_7, %c0_8] : memref<8x128xf32, #tpu.memory_space<vmem>>, vector<8x128xf32>
    tpu.vector_store %arg4[%c0_7, %c0_8], %16 {strides = array<i32>} : memref<8x128xf32, #tpu.memory_space<vmem>>, vector<8x128xf32>,
    return
  }
  func.func @transform_0(%arg0: i32) -> (i32, i32) {
    %c0_i32 = arith.constant 0 : i32
    %c0_i32_0 = arith.constant 0 : i32
    return %arg0, %c0_i32 : i32, i32
  }
  func.func @transform_1(%arg0: i32) -> (i32, i32) {
    %c0_i32 = arith.constant 0 : i32
    %c0_i32_0 = arith.constant 0 : i32
    %c0_i32_1 = arith.constant 0 : i32
    return %c0_i32, %c0_i32_0 : i32, i32
  }
  func.func @transform_2(%arg0: i32) -> (i32, i32) {
    %c0_i32 = arith.constant 0 : i32
    %c0_i32_0 = arith.constant 0 : i32
    %c0_i32_1 = arith.constant 0 : i32
    return %c0_i32, %c0_i32_0 : i32, i32
  }
  func.func @transform_3(%arg0: i32) -> (i32, i32) {
    %c0_i32 = arith.constant 0 : i32
    %c0_i32_0 = arith.constant 0 : i32
    return %arg0, %c0_i32 : i32, i32
  }
}

</mosaic_0001>

<bundles_post_ra>
// kernel: tpu_custom_call.1
= control target key start
LH: loop header
LB: loop body
LE: loop exit
PB: predicated region body
PF: predicated region fallthrough
CT: control target
= control target key end

     0   :  { %8 = vsyncpa [#allocation3], 0  ;;  %s2179_s0 = inlined_call_operand.hbm [shape: f32[8,2137], index: 0, kind: input, shape index: {}]   ;;  %s2180_s1 = inlined_call_operand.hbm [shape: bf16[2137,128], index: 1, kind: input, shape index: {}]   ;;  %s2181_s2 = inlined_call_operand.vmem [shape: f32[1,128], index: 2, kind: input, shape index: {}]   ;;  %s2182_s3 = inlined_call_operand.hbm [shape: f32[8,128], index: 3, kind: output, shape index: {}]  }
   0x1   :  { %9 = vsyncpa [#allocation6], 0 }
   0x2   :  { %10 = vsyncpa [#allocation4], 0  ;;  %s2105_s12 = smov [#allocation2]   ;;  %s2106_s14 = smov [#allocation5]  }
   0x3   :  { %s17_s13 = sshll.u32 %s2105_s12, 4  ;;  %s26_s15 = sshll.u32 %s2106_s14, 4  ;;  %s18_s13 = int_to_ptr.vmem [resolvable:$true] %s17_s13  ;;  %s2133_s15 = int_to_ptr.vmem [resolvable:$true] %s26_s15 }
   0x4   :  { %s2033_s18 = scalar_lea.hbm %s2179_s0, 2176 }
   0x5   :  { %p2034_p0 = scmp.ne.s32.totalorder %s2179_s0, %s2033_s18  ;;  %p2037_p1 = scmp.lt.u32.totalorder %s2033_s18, %s2179_s0 }
   0x7   :  { %p2039_p2 = pnand %p2037_p1, %p2034_p0 }
   0x9   :  { %2042 = shalt.err (!%p2039_p2)
}
   0xa   :  { %s2043_s23 = scalar_lea.vmem %s18_s13, 2176  ;;  %p2048_p4 = scmp.lt.s32.totalorder %s18_s13, %s18_s13 }
   0xb   :  { %p2044_p3 = scmp.ne.s32.totalorder %s18_s13, %s2043_s23  ;;  %p2049_p5 = scmp.lt.s32.totalorder %s2043_s23, %s2043_s23 }
   0xd   :  { %p2050_p6 = por %p2049_p5, %p2048_p4 }
   0xf   :  { %p2051_p7 = pnand %p2050_p6, %p2044_p3 }
  0x11   :  { %2054 = shalt.err (!%p2051_p7)
}
  0x12   :  { %20 = dma.hbm_to_vmem [thread:$0]  %s2179_s0, 2176, %s18_s13, [#allocation3]  }
  0x13   :  { %s2055_s28 = scalar_lea.hbm %s2180_s1, 17152 }
  0x14   :  { %p2056_p8 = scmp.ne.s32.totalorder %s2180_s1, %s2055_s28  ;;  %p2059_p9 = scmp.lt.u32.totalorder %s2055_s28, %s2180_s1 }
  0x16   :  { %p2061_p10 = pnand %p2059_p9, %p2056_p8 }
  0x18   :  { %2064 = shalt.err (!%p2061_p10)
}
  0x19   :  { %s2065_s6 = scalar_lea.vmem %s2133_s15, 17152  ;;  %p2070_p12 = scmp.lt.s32.totalorder %s2133_s15, %s2133_s15 }
  0x1a   :  { %p2066_p11 = scmp.ne.s32.totalorder %s2133_s15, %s2065_s6  ;;  %p2071_p13 = scmp.lt.s32.totalorder %s2065_s6, %s2065_s6 }
  0x1c   :  { %p2072_p0 = por %p2071_p13, %p2070_p12 }
  0x1e   :  { %p2073_p1 = pnand %p2072_p0, %p2066_p11 }
  0x20   :  { %2076 = shalt.err (!%p2073_p1)
}
  0x21   :  { %s2107_s0 = smov 64   ;;  %s2108_s7 = smov 4  }
  0x22   :  { %32 = dma.hbm_to_vmem [thread:$0]  %s2180_s1, 17152, %s2133_s15, [#allocation6], %s2107_s0, %s2107_s0, %s2108_s7  }
  0x23   :  { %2099 = dma.done.wait [#allocation3], 2176  }
  0x24   :  { %2100 = vsyncadd [#allocation3], 4294965120 }
  0x25   :  { %2101 = dma.done.wait [#allocation6], 17152  }
  0x26   :  { %2102 = vsyncadd [#allocation6], 4294950144  ;;  %v1895_v0 = vld [vmem:[#allocation5 + $0x40] sm:$0xff]   ;;  %v1899_v4 = vld [vmem:[#allocation5 + $0x48] sm:$0xff]   ;;  %vm2110_vm0 = vmmov 0   ;;  %vm1158_vm1 = vcmask 1043456  }
  0x27   :  { %v1896_v1 = vld [vmem:[#allocation5] sm:$0xff]   ;;  %1688 = vmatprep.subr.bf16.mxu0 %v1895_v0  ;;  %v1900_v5 = vld [vmem:[#allocation5 + $0x8] sm:$0xff]   ;;  %v1903_v8 = vld [vmem:[#allocation5 + $0x50] sm:$0xff]   ;;  %vm1159_vm2 = vcmask 1044480   ;;  %vm1154_vm3 = vcmask 728064  }
  0x28   :  { %v1897_v2 = vld [vmem:[#allocation5 + $0xc0] sm:$0xff]   ;;  %1689 = vmatpush3.bf16.msra.mxu0 %v1896_v1  ;;  %v1901_v6 = vld [vmem:[#allocation5 + $0xc8] sm:$0xff]   ;;  %v1904_v9 = vld [vmem:[#allocation5 + $0x10] sm:$0xff]  }
  0x29   :  { %v1898_v3 = vld [vmem:[#allocation5 + $0x80] sm:$0xff]   ;;  %1710 = vmatprep.subr.bf16.mxu1 %v1897_v2  ;;  %1690 = vmatprep.subr.bf16.mxu0 %v1899_v4  ;;  %v1902_v7 = vld [vmem:[#allocation5 + $0x88] sm:$0xff]   ;;  %v1905_v10 = vld [vmem:[#allocation5 + $0xd0] sm:$0xff]  }
  0x2a   :  { %1711 = vmatpush3.bf16.msra.mxu1 %v1898_v3  ;;  %v1906_v11 = vld [vmem:[#allocation5 + $0x90] sm:$0xff]   ;;  %v1907_v12 = vld [vmem:[#allocation5 + $0x58] sm:$0xff]   ;;  %v1911_v16 = vld [vmem:[#allocation5 + $0x60] sm:$0xff]  }
  0x2b   :  { %1712 = vmatprep.subr.bf16.mxu1 %v1901_v6  ;;  %v1908_v13 = vld [vmem:[#allocation5 + $0x18] sm:$0xff]   ;;  %v1912_v17 = vld [vmem:[#allocation5 + $0x20] sm:$0xff]   ;;  %v1915_v20 = vld [vmem:[#allocation5 + $0x68] sm:$0xff]  }
  0x2c   :  { %1691 = vmatpush3.bf16.msra.mxu0 %v1900_v5  ;;  %v1909_v14 = vld [vmem:[#allocation5 + $0xd8] sm:$0xff]   ;;  %v1913_v18 = vld [vmem:[#allocation5 + $0xe0] sm:$0xff]   ;;  %v1916_v21 = vld [vmem:[#allocation5 + $0x28] sm:$0xff]  }
  0x2d   :  { %1692 = vmatprep.subr.bf16.mxu0 %v1903_v8  ;;  %v1910_v15 = vld [vmem:[#allocation5 + $0x98] sm:$0xff]   ;;  %v1914_v19 = vld [vmem:[#allocation5 + $0xa0] sm:$0xff]   ;;  %v1917_v22 = vld [vmem:[#allocation5 + $0xe8] sm:$0xff]  }
  0x2e   :  { %1713 = vmatpush3.bf16.msra.mxu1 %v1902_v7  ;;  %v1918_v23 = vld [vmem:[#allocation5 + $0xa8] sm:$0xff]   ;;  %v1919_v24 = vld [vmem:[#allocation5 + $0x70] sm:$0xff]   ;;  %v1923_v28 = vld [vmem:[#allocation5 + $0x78] sm:$0xff]  }
  0x2f   :  { %1714 = vmatprep.subr.bf16.mxu1 %v1905_v10  ;;  %v1920_v25 = vld [vmem:[#allocation5 + $0x30] sm:$0xff]   ;;  %v1924_v29 = vld [vmem:[#allocation5 + $0x38] sm:$0xff]   ;;  %v43_v31 = vld [vmem:[#allocation2 + $0x8] sm:$0xff] }
  0x30   :  { %1693 = vmatpush3.bf16.msra.mxu0 %v1904_v9  ;;  %v1921_v26 = vld [vmem:[#allocation5 + $0xf0] sm:$0xff]   ;;  %v1925_v30 = vld [vmem:[#allocation5 + $0xf8] sm:$0xff]   ;;  %v60_v32 = vpack.c.bf16 %v43_v31, %v43_v31  ;;  %v1927_v36 = vld [vmem:[#allocation5 + $0x140] sm:$0xff]  }
  0x31   :  { %1694 = vmatprep.subr.bf16.mxu0 %v1907_v12  ;;  %v1922_v27 = vld [vmem:[#allocation5 + $0xb0] sm:$0xff]   ;;  %v1926_v33 = vld [vmem:[#allocation5 + $0xb8] sm:$0xff]   ;;  %v1928_v39 = vld [vmem:[#allocation5 + $0x100] sm:$0xff]  }
  0x32   :  { %1715 = vmatpush3.bf16.msra.mxu1 %v1906_v11  ;;  %v42_v34 = vld [vmem:[#allocation2] sm:$0xff]  ;;  %v45_v37 = vld [vmem:[#allocation2 + $0x18] sm:$0xff]  ;;  %1197 = vmatprep.mubr.bf16.mxu0 %v60_v32  ;;  %v44_v40 = vld [vmem:[#allocation2 + $0x10] sm:$0xff] }
  0x33   :  { %1716 = vmatprep.subr.bf16.mxu1 %v1909_v14  ;;  %v59_v35 = vpack.c.bf16 %v42_v34, %v42_v34  ;;  %v62_v38 = vpack.c.bf16 %v45_v37, %v45_v37  ;;  %v61_v41 = vpack.c.bf16 %v44_v40, %v44_v40  ;;  %v1929_v42 = vld [vmem:[#allocation5 + $0x1c0] sm:$0xff]   ;;  %v1931_v44 = vld [vmem:[#allocation5 + $0x148] sm:$0xff]   ;;  %v1935_v48 = vld [vmem:[#allocation5 + $0x150] sm:$0xff]  }
  0x34   :  { %1695 = vmatpush3.bf16.msra.mxu0 %v1908_v13  ;;  %v1930_v43 = vld [vmem:[#allocation5 + $0x180] sm:$0xff]   ;;  %v1932_v45 = vld [vmem:[#allocation5 + $0x108] sm:$0xff]   ;;  %v1936_v49 = vld [vmem:[#allocation5 + $0x110] sm:$0xff]  }
  0x35   :  { %1696 = vmatprep.subr.bf16.mxu0 %v1911_v16  ;;  %1237 = vmatprep.mubr.bf16.mxu1 %v62_v38  ;;  %v1933_v46 = vld [vmem:[#allocation5 + $0x1c8] sm:$0xff]   ;;  %v1937_v50 = vld [vmem:[#allocation5 + $0x1d0] sm:$0xff]   ;;  %v1939_v52 = vld [vmem:[#allocation5 + $0x158] sm:$0xff]  }
  0x36   :  { %1717 = vmatpush3.bf16.msra.mxu1 %v1910_v15  ;;  %v1934_v47 = vld [vmem:[#allocation5 + $0x188] sm:$0xff]   ;;  %v1938_v51 = vld [vmem:[#allocation5 + $0x190] sm:$0xff]   ;;  %v1940_v53 = vld [vmem:[#allocation5 + $0x118] sm:$0xff]  }
  0x37   :  { %1718 = vmatprep.subr.bf16.mxu1 %v1913_v18  ;;  %v1941_v54 = vld [vmem:[#allocation5 + $0x1d8] sm:$0xff]   ;;  %v1943_v56 = vld [vmem:[#allocation5 + $0x160] sm:$0xff]   ;;  %v1947_v60 = vld [vmem:[#allocation5 + $0x168] sm:$0xff]  }
  0x38   :  { %1697 = vmatpush3.bf16.msra.mxu0 %v1912_v17  ;;  %v1942_v55 = vld [vmem:[#allocation5 + $0x198] sm:$0xff]   ;;  %v1944_v57 = vld [vmem:[#allocation5 + $0x120] sm:$0xff]   ;;  %v1948_v61 = vld [vmem:[#allocation5 + $0x128] sm:$0xff]  }
  0x39   :  { %1698 = vmatprep.subr.bf16.mxu0 %v1915_v20  ;;  %v1945_v58 = vld [vmem:[#allocation5 + $0x1e0] sm:$0xff]   ;;  %v1949_v62 = vld [vmem:[#allocation5 + $0x1e8] sm:$0xff]   ;;  %v1951_v0 = vld [vmem:[#allocation5 + $0x170] sm:$0xff]  }
  0x3a   :  { %1719 = vmatpush3.bf16.msra.mxu1 %v1914_v19  ;;  %v1946_v59 = vld [vmem:[#allocation5 + $0x1a0] sm:$0xff]   ;;  %v1950_v63 = vld [vmem:[#allocation5 + $0x1a8] sm:$0xff]   ;;  %v1952_v1 = vld [vmem:[#allocation5 + $0x130] sm:$0xff]  }
  0x3b   :  { %1720 = vmatprep.subr.bf16.mxu1 %v1917_v22  ;;  %v1953_v2 = vld [vmem:[#allocation5 + $0x1f0] sm:$0xff]   ;;  %v1955_v4 = vld [vmem:[#allocation5 + $0x178] sm:$0xff]   ;;  %v47_v7 = vld [vmem:[#allocation2 + $0x28] sm:$0xff] }
  0x3c   :  { %1699 = vmatpush3.bf16.msra.mxu0 %v1916_v21  ;;  %v1954_v3 = vld [vmem:[#allocation5 + $0x1b0] sm:$0xff]   ;;  %v1956_v5 = vld [vmem:[#allocation5 + $0x138] sm:$0xff]   ;;  %v64_v8 = vpack.c.bf16 %v47_v7, %v47_v7  ;;  %v1959_v12 = vld [vmem:[#allocation5 + $0x240] sm:$0xff]  }
  0x3d   :  { %1700 = vmatprep.subr.bf16.mxu0 %v1919_v24  ;;  %v1957_v6 = vld [vmem:[#allocation5 + $0x1f8] sm:$0xff]   ;;  %v49_v13 = vld [vmem:[#allocation2 + $0x38] sm:$0xff]  ;;  %v1960_v15 = vld [vmem:[#allocation5 + $0x200] sm:$0xff]  }
  0x3e   :  { %1721 = vmatpush3.bf16.msra.mxu1 %v1918_v23  ;;  %v1958_v9 = vld [vmem:[#allocation5 + $0x1b8] sm:$0xff]   ;;  %v66_v14 = vpack.c.bf16 %v49_v13, %v49_v13  ;;  %v48_v16 = vld [vmem:[#allocation2 + $0x30] sm:$0xff]  ;;  %v1961_v18 = vld [vmem:[#allocation5 + $0x2c0] sm:$0xff]  }
  0x3f   :  { %1722 = vmatprep.subr.bf16.mxu1 %v1921_v26  ;;  %v46_v10 = vld [vmem:[#allocation2 + $0x20] sm:$0xff]  ;;  %v65_v17 = vpack.c.bf16 %v48_v16, %v48_v16  ;;  %v1962_v19 = vld [vmem:[#allocation5 + $0x280] sm:$0xff]   ;;  %v1963_v20 = vld [vmem:[#allocation5 + $0x248] sm:$0xff]  }
  0x40   :  { %1701 = vmatpush3.bf16.msra.mxu0 %v1920_v25  ;;  %v63_v11 = vpack.c.bf16 %v46_v10, %v46_v10  ;;  %v1964_v21 = vld [vmem:[#allocation5 + $0x208] sm:$0xff]   ;;  %v1967_v24 = vld [vmem:[#allocation5 + $0x250] sm:$0xff]   ;;  %v1974_v31 = vld [vmem:[#allocation5 + $0x298] sm:$0xff]  }
  0x41   :  { %1702 = vmatprep.subr.bf16.mxu0 %v1923_v28  ;;  %v1965_v22 = vld [vmem:[#allocation5 + $0x2c8] sm:$0xff]   ;;  %v1968_v25 = vld [vmem:[#allocation5 + $0x210] sm:$0xff]   ;;  %v1971_v28 = vld [vmem:[#allocation5 + $0x258] sm:$0xff]  }
  0x42   :  { %1723 = vmatpush3.bf16.msra.mxu1 %v1922_v27  ;;  %v1966_v23 = vld [vmem:[#allocation5 + $0x288] sm:$0xff]   ;;  %v1969_v26 = vld [vmem:[#allocation5 + $0x2d0] sm:$0xff]   ;;  %v1975_v32 = vld [vmem:[#allocation5 + $0x260] sm:$0xff]  }
  0x43   :  { %1724 = vmatprep.subr.bf16.mxu1 %v1925_v30  ;;  %v1970_v27 = vld [vmem:[#allocation5 + $0x290] sm:$0xff]   ;;  %v1973_v30 = vld [vmem:[#allocation5 + $0x2d8] sm:$0xff]   ;;  %v1977_v34 = vld [vmem:[#allocation5 + $0x2e0] sm:$0xff]  }
  0x44   :  { %1703 = vmatpush3.bf16.msra.mxu0 %v1924_v29  ;;  %v1972_v29 = vld [vmem:[#allocation5 + $0x218] sm:$0xff]   ;;  %v1980_v37 = vld [vmem:[#allocation5 + $0x228] sm:$0xff]   ;;  %v1983_v40 = vld [vmem:[#allocation5 + $0x270] sm:$0xff]  }
  0x45   :  { %1732 = vmatprep.subr.bf16.mxu0 %v1927_v36  ;;  %v1979_v36 = vld [vmem:[#allocation5 + $0x268] sm:$0xff]   ;;  %v2006_v7 = vld [vmem:[#allocation5 + $0x398] sm:$0xff]   ;;  %v2009_v10 = vld [vmem:[#allocation5 + $0x3e0] sm:$0xff]  }
  0x46   :  { %1725 = vmatpush3.bf16.msra.mxu1 %v1926_v33  ;;  %v1976_v33 = vld [vmem:[#allocation5 + $0x220] sm:$0xff]   ;;  %v1981_v38 = vld [vmem:[#allocation5 + $0x2e8] sm:$0xff]   ;;  %v2015_v16 = vld [vmem:[#allocation5 + $0x370] sm:$0xff]  }
  0x47   :  { %1198 = vmatmul.mubr.bf16.vlgmr.msra.gmra.mrb[0].mxu0 %v59_v35  ;;  %1754 = vmatprep.subr.bf16.mxu1 %v1929_v42  ;;  %v1978_v35 = vld [vmem:[#allocation5 + $0x2a0] sm:$0xff]   ;;  %v1985_v42 = vld [vmem:[#allocation5 + $0x2f0] sm:$0xff]   ;;  %v2012_v13 = vld [vmem:[#allocation5 + $0x328] sm:$0xff]  }
  0x48   :  { %1733 = vmatpush3.bf16.msra.mxu0 %v1928_v39  ;;  %1277 = vmatprep.mubr.bf16.mxu0 %v64_v8  ;;  %v1982_v39 = vld [vmem:[#allocation5 + $0x2a8] sm:$0xff]   ;;  %v2007_v8 = vld [vmem:[#allocation5 + $0x360] sm:$0xff]  }
  0x49   :  { %1238 = vmatmul.mubr.bf16.vlgmr.msra.gmra.mrb[0].mxu1 %v61_v41  ;;  %1734 = vmatprep.subr.bf16.mxu0 %v1931_v44  ;;  %v1984_v41 = vld [vmem:[#allocation5 + $0x230] sm:$0xff]   ;;  %v1987_v44 = vld [vmem:[#allocation5 + $0x278] sm:$0xff]  }
  0x4a   :  { %1755 = vmatpush3.bf16.msra.mxu1 %v1930_v43  ;;  %1317 = vmatprep.mubr.bf16.mxu1 %v66_v14  ;;  %v1986_v43 = vld [vmem:[#allocation5 + $0x2b0] sm:$0xff]   ;;  %v2013_v14 = vld [vmem:[#allocation5 + $0x3e8] sm:$0xff]  }
  0x4b   :  { %1756 = vmatprep.subr.bf16.mxu1 %v1933_v46  ;;  %v1989_v46 = vld [vmem:[#allocation5 + $0x2f8] sm:$0xff]  }
  0x4c   :  { %1735 = vmatpush3.bf16.msra.mxu0 %v1932_v45  ;;  %v1988_v45 = vld [vmem:[#allocation5 + $0x238] sm:$0xff]  }
  0x4d   :  { %1736 = vmatprep.subr.bf16.mxu0 %v1935_v48 }
  0x4e   :  { %1757 = vmatpush3.bf16.msra.mxu1 %v1934_v47  ;;  %v51_v47 = vld [vmem:[#allocation2 + $0x48] sm:$0xff] }
  0x4f   :  { %1758 = vmatprep.subr.bf16.mxu1 %v1937_v50  ;;  %v68_v48 = vpack.c.bf16 %v51_v47, %v51_v47  ;;  %v50_v50 = vld [vmem:[#allocation2 + $0x40] sm:$0xff] }
  0x50   :  { %1737 = vmatpush3.bf16.msra.mxu0 %v1936_v49  ;;  %v1990_v49 = vld [vmem:[#allocation5 + $0x2b8] sm:$0xff]  }
  0x51   :  { %1738 = vmatprep.subr.bf16.mxu0 %v1939_v52  ;;  %v1991_v52 = vld [vmem:[#allocation5 + $0x340] sm:$0xff]  }
  0x52   :  { %1759 = vmatpush3.bf16.msra.mxu1 %v1938_v51  ;;  %v67_v51 = vpack.c.bf16 %v50_v50, %v50_v50 }
  0x53   :  { %1760 = vmatprep.subr.bf16.mxu1 %v1941_v54 }
  0x54   :  { %1739 = vmatpush3.bf16.msra.mxu0 %v1940_v53  ;;  %v53_v53 = vld [vmem:[#allocation2 + $0x58] sm:$0xff] }
  0x55   :  { %1740 = vmatprep.subr.bf16.mxu0 %v1943_v56  ;;  %v70_v54 = vpack.c.bf16 %v53_v53, %v53_v53  ;;  %v52_v56 = vld [vmem:[#allocation2 + $0x50] sm:$0xff] }
  0x56   :  { %1761 = vmatpush3.bf16.msra.mxu1 %v1942_v55  ;;  %v1992_v55 = vld [vmem:[#allocation5 + $0x300] sm:$0xff]  }
  0x57   :  { %1762 = vmatprep.subr.bf16.mxu1 %v1945_v58  ;;  %v1993_v58 = vld [vmem:[#allocation5 + $0x3c0] sm:$0xff]  }
  0x58   :  { %1741 = vmatpush3.bf16.msra.mxu0 %v1944_v57  ;;  %v69_v57 = vpack.c.bf16 %v52_v56, %v52_v56 }
  0x59   :  { %1742 = vmatprep.subr.bf16.mxu0 %v1947_v60  ;;  %v1995_v60 = vld [vmem:[#allocation5 + $0x348] sm:$0xff]  }
  0x5a   :  { %1763 = vmatpush3.bf16.msra.mxu1 %v1946_v59  ;;  %v1994_v59 = vld [vmem:[#allocation5 + $0x380] sm:$0xff]  }
  0x5b   :  { %1764 = vmatprep.subr.bf16.mxu1 %v1949_v62  ;;  %v1997_v62 = vld [vmem:[#allocation5 + $0x3c8] sm:$0xff]  }
  0x5c   :  { %1743 = vmatpush3.bf16.msra.mxu0 %v1948_v61  ;;  %v1996_v61 = vld [vmem:[#allocation5 + $0x308] sm:$0xff]  }
  0x5d   :  { %1744 = vmatprep.subr.bf16.mxu0 %v1951_v0  ;;  %v1999_v0 = vld [vmem:[#allocation5 + $0x350] sm:$0xff]  }
  0x5e   :  { %1765 = vmatpush3.bf16.msra.mxu1 %v1950_v63  ;;  %v1998_v63 = vld [vmem:[#allocation5 + $0x388] sm:$0xff]  }
  0x5f   :  { %1766 = vmatprep.subr.bf16.mxu1 %v1953_v2  ;;  %v2001_v2 = vld [vmem:[#allocation5 + $0x3d0] sm:$0xff]  }
  0x60   :  { %1745 = vmatpush3.bf16.msra.mxu0 %v1952_v1  ;;  %v2000_v1 = vld [vmem:[#allocation5 + $0x310] sm:$0xff]  }
  0x61   :  { %1746 = vmatprep.subr.bf16.mxu0 %v1955_v4  ;;  %v2003_v4 = vld [vmem:[#allocation5 + $0x358] sm:$0xff]  }
  0x62   :  { %1767 = vmatpush3.bf16.msra.mxu1 %v1954_v3  ;;  %v2002_v3 = vld [vmem:[#allocation5 + $0x390] sm:$0xff]  }
  0x63   :  { %1768 = vmatprep.subr.bf16.mxu1 %v1957_v6  ;;  %v2005_v6 = vld [vmem:[#allocation5 + $0x3d8] sm:$0xff]  }
  0x64   :  { %1747 = vmatpush3.bf16.msra.mxu0 %v1956_v5  ;;  %v2004_v5 = vld [vmem:[#allocation5 + $0x318] sm:$0xff]  }
  0x65   :  { %1776 = vmatprep.subr.bf16.mxu0 %v1959_v12  ;;  %v2011_v12 = vld [vmem:[#allocation5 + $0x368] sm:$0xff]  }
  0x66   :  { %1769 = vmatpush3.bf16.msra.mxu1 %v1958_v9  ;;  %v2008_v9 = vld [vmem:[#allocation5 + $0x320] sm:$0xff]  }
  0x67   :  { %1278 = vmatmul.mubr.bf16.vlgmr.msra.gmra.mrb[4].mxu0 %v63_v11  ;;  %1798 = vmatprep.subr.bf16.mxu1 %v1961_v18  ;;  %v2010_v11 = vld [vmem:[#allocation5 + $0x3a0] sm:$0xff]   ;;  %v2017_v18 = vld [vmem:[#allocation5 + $0x3f0] sm:$0xff]  }
  0x68   :  { %1777 = vmatpush3.bf16.msra.mxu0 %v1960_v15  ;;  %1357 = vmatprep.mubr.bf16.mxu0 %v68_v48  ;;  %v2014_v15 = vld [vmem:[#allocation5 + $0x3a8] sm:$0xff]  }
  0x69   :  { %1318 = vmatmul.mubr.bf16.vlgmr.msra.gmra.mrb[4].mxu1 %v65_v17  ;;  %1778 = vmatprep.subr.bf16.mxu0 %v1963_v20  ;;  %v2016_v17 = vld [vmem:[#allocation5 + $0x330] sm:$0xff]   ;;  %v2019_v20 = vld [vmem:[#allocation5 + $0x378] sm:$0xff]  }
  0x6a   :  { %1799 = vmatpush3.bf16.msra.mxu1 %v1962_v19  ;;  %1397 = vmatprep.mubr.bf16.mxu1 %v70_v54  ;;  %v2018_v19 = vld [vmem:[#allocation5 + $0x3b0] sm:$0xff]  }
  0x6b   :  { %1800 = vmatprep.subr.bf16.mxu1 %v1965_v22  ;;  %v2021_v22 = vld [vmem:[#allocation5 + $0x3f8] sm:$0xff]  }
  0x6c   :  { %1779 = vmatpush3.bf16.msra.mxu0 %v1964_v21  ;;  %v2020_v21 = vld [vmem:[#allocation5 + $0x338] sm:$0xff]  }
  0x6d   :  { %1780 = vmatprep.subr.bf16.mxu0 %v1967_v24 }
  0x6e   :  { %1801 = vmatpush3.bf16.msra.mxu1 %v1966_v23  ;;  %v55_v23 = vld [vmem:[#allocation2 + $0x68] sm:$0xff] }
  0x6f   :  { %1802 = vmatprep.subr.bf16.mxu1 %v1969_v26  ;;  %v72_v24 = vpack.c.bf16 %v55_v23, %v55_v23  ;;  %v54_v26 = vld [vmem:[#allocation2 + $0x60] sm:$0xff] }
  0x70   :  { %1781 = vmatpush3.bf16.msra.mxu0 %v1968_v25  ;;  %v2022_v25 = vld [vmem:[#allocation5 + $0x3b8] sm:$0xff]  }
  0x71   :  { %1782 = vmatprep.subr.bf16.mxu0 %v1971_v28  ;;  %v57_v28 = vld [vmem:[#allocation2 + $0x78] sm:$0xff] }
  0x72   :  { %1803 = vmatpush3.bf16.msra.mxu1 %v1970_v27  ;;  %v2109_v27 = vmov 0.0  }
  0x73   :  { %1804 = vmatprep.subr.bf16.mxu1 %v1973_v30  ;;  %v74_v30 = vpack.c.bf16 %v57_v28, %v57_v28 }
  0x74   :  { %1783 = vmatpush3.bf16.msra.mxu0 %v1972_v29  ;;  %v71_v29 = vpack.c.bf16 %v54_v26, %v54_v26 }
  0x75   :  { %1784 = vmatprep.subr.bf16.mxu0 %v1975_v32  ;;  %v56_v32 = vld [vmem:[#allocation2 + $0x70] sm:$0xff] }
  0x76   :  { %1805 = vmatpush3.bf16.msra.mxu1 %v1974_v31  ;;  %v2023_v31 = vld [vmem:[#allocation5 + $0x400] sm:$0xff]  }
  0x77   :  { %1806 = vmatprep.subr.bf16.mxu1 %v1977_v34  ;;  %v2024_v34 = vld [vmem:[#allocation5 + $0x408] sm:$0xff]  }
  0x78   :  { %1785 = vmatpush3.bf16.msra.mxu0 %v1976_v33  ;;  %v73_v33 = vpack.c.bf16 %v56_v32, %v56_v32 }
  0x79   :  { %1786 = vmatprep.subr.bf16.mxu0 %v1979_v36  ;;  %v2026_v36 = vld [vmem:[#allocation5 + $0x418] sm:$0xff]  }
  0x7a   :  { %1807 = vmatpush3.bf16.msra.mxu1 %v1978_v35  ;;  %v2025_v35 = vld [vmem:[#allocation5 + $0x410] sm:$0xff]  }
  0x7b   :  { %1808 = vmatprep.subr.bf16.mxu1 %v1981_v38 }
  0x7c   :  { %1787 = vmatpush3.bf16.msra.mxu0 %v1980_v37  ;;  %v2111_v37 = vmov 65535  }
  0x7d   :  { %1788 = vmatprep.subr.bf16.mxu0 %v1983_v40  ;;  %v1160_v38 = vsel %vm1158_vm1, 4294967295, %v2111_v37  ;;  %v2028_v40 = vld [vmem:[#allocation5 + $0x428] sm:$0x1f]  }
  0x7e   :  { %1809 = vmatpush3.bf16.msra.mxu1 %v1982_v39  ;;  %v2027_v39 = vld [vmem:[#allocation5 + $0x420] sm:$0xff]  }
  0x7f   :  { %1810 = vmatprep.subr.bf16.mxu1 %v1985_v42 }
  0x80   :  { %1789 = vmatpush3.bf16.msra.mxu0 %v1984_v41  ;;  %v1161_v41 = vsel %vm1159_vm2, %v1160_v38, 0 }
  0x81   :  { %1790 = vmatprep.subr.bf16.mxu0 %v1987_v44  ;;  %v1163_v42 = vand.u32 %v2028_v40, %v1161_v41 }
  0x82   :  { %1811 = vmatpush3.bf16.msra.mxu1 %v1986_v43  ;;  %v58_v43 = vld [vmem:[#allocation2 + $0x80] sm:$0xff] }
  0x83   :  { %1812 = vmatprep.subr.bf16.mxu1 %v1989_v46  ;;  %v75_v44 = vpack.c.bf16 %v58_v43, %v58_v43  ;;  %v1552_v46 = vld [vmem:[%s2181_s2] ss:$0 sm:$0xff]  ;;  %s2112_s2 = smov [#allocation7]  }
  0x84   :  { %1791 = vmatpush3.bf16.msra.mxu0 %v1988_v45  ;;  %s1542_s11 = sshll.u32 %s2112_s2, 4  ;;  %s1543_s11 = int_to_ptr.vmem [resolvable:$true] %s1542_s11 }
  0x85   :  { %1820 = vmatprep.subr.bf16.mxu0 %v1991_v52  ;;  %s2077_s12 = scalar_lea.vmem %s1543_s11, 128  ;;  %p2082_p3 = scmp.lt.s32.totalorder %s1543_s11, %s1543_s11 }
  0x86   :  { %1813 = vmatpush3.bf16.msra.mxu1 %v1990_v49  ;;  %p2078_p2 = scmp.ne.s32.totalorder %s1543_s11, %s2077_s12  ;;  %p2083_p4 = scmp.lt.s32.totalorder %s2077_s12, %s2077_s12 }
  0x87   :  { %1358 = vmatmul.mubr.bf16.vlgmr.msra.gmra.mrb[8].mxu0 %v67_v51  ;;  %1842 = vmatprep.subr.bf16.mxu1 %v1993_v58 }
  0x88   :  { %1821 = vmatpush3.bf16.msra.mxu0 %v1992_v55  ;;  %1437 = vmatprep.mubr.bf16.mxu0 %v72_v24  ;;  %p2084_p5 = por %p2083_p4, %p2082_p3 }
  0x89   :  { %1398 = vmatmul.mubr.bf16.vlgmr.msra.gmra.mrb[8].mxu1 %v69_v57  ;;  %1822 = vmatprep.subr.bf16.mxu0 %v1995_v60 }
  0x8a   :  { %1843 = vmatpush3.bf16.msra.mxu1 %v1994_v59  ;;  %1477 = vmatprep.mubr.bf16.mxu1 %v74_v30  ;;  %p2085_p6 = pnand %p2084_p5, %p2078_p2 }
  0x8b   :  { %1844 = vmatprep.subr.bf16.mxu1 %v1997_v62 }
  0x8c   :  { %1823 = vmatpush3.bf16.msra.mxu0 %v1996_v61 }
  0x8d   :  { %1824 = vmatprep.subr.bf16.mxu0 %v1999_v0 }
  0x8e   :  { %1845 = vmatpush3.bf16.msra.mxu1 %v1998_v63 }
  0x8f   :  { %1846 = vmatprep.subr.bf16.mxu1 %v2001_v2 }
  0x90   :  { %1825 = vmatpush3.bf16.msra.mxu0 %v2000_v1 }
  0x91   :  { %1826 = vmatprep.subr.bf16.mxu0 %v2003_v4 }
  0x92   :  { %1847 = vmatpush3.bf16.msra.mxu1 %v2002_v3 }
  0x93   :  { %1848 = vmatprep.subr.bf16.mxu1 %v2005_v6 }
  0x94   :  { %1827 = vmatpush3.bf16.msra.mxu0 %v2004_v5 }
  0x95   :  { %1828 = vmatprep.subr.bf16.mxu0 %v2007_v8 }
  0x96   :  { %1849 = vmatpush3.bf16.msra.mxu1 %v2006_v7 }
  0x97   :  { %1850 = vmatprep.subr.bf16.mxu1 %v2009_v10 }
  0x98   :  { %1829 = vmatpush3.bf16.msra.mxu0 %v2008_v9 }
  0x99   :  { %1830 = vmatprep.subr.bf16.mxu0 %v2011_v12 }
  0x9a   :  { %1851 = vmatpush3.bf16.msra.mxu1 %v2010_v11 }
  0x9b   :  { %1852 = vmatprep.subr.bf16.mxu1 %v2013_v14 }
  0x9c   :  { %1831 = vmatpush3.bf16.msra.mxu0 %v2012_v13 }
  0x9d   :  { %1832 = vmatprep.subr.bf16.mxu0 %v2015_v16 }
  0x9e   :  { %1853 = vmatpush3.bf16.msra.mxu1 %v2014_v15 }
  0x9f   :  { %1854 = vmatprep.subr.bf16.mxu1 %v2017_v18 }
  0xa0   :  { %1833 = vmatpush3.bf16.msra.mxu0 %v2016_v17 }
  0xa1   :  { %1834 = vmatprep.subr.bf16.mxu0 %v2019_v20 }
  0xa2   :  { %1855 = vmatpush3.bf16.msra.mxu1 %v2018_v19 }
  0xa3   :  { %1856 = vmatprep.subr.bf16.mxu1 %v2021_v22 }
  0xa4   :  { %1835 = vmatpush3.bf16.msra.mxu0 %v2020_v21 }
  0xa5   :  { %1871 = vmatprep.subr.bf16.mxu0 %v2109_v27 }
  0xa6   :  { %1857 = vmatpush3.bf16.msra.mxu1 %v2022_v25 }
  0xa7   :  { %1438 = vmatmul.mubr.bf16.vlgmr.msra.gmra.mrb[12].mxu0 %v71_v29 }
  0xa8   :  { %1872 = vmatpush3.bf16.msra.mxu0 %v2023_v31  ;;  %1883 = vmatprep.mubr.msk.bf16.mxu0 %vm2110_vm0, %v2109_v27 }
  0xa9   :  { %1478 = vmatmul.mubr.bf16.vlgmr.msra.gmra.mrb[12].mxu1 %v73_v33  ;;  %1873 = vmatprep.subr.bf16.mxu0 %v2109_v27 }
  0xac   :  { %1874 = vmatpush3.bf16.msra.mxu0 %v2024_v34 }
  0xad   :  { %1875 = vmatprep.subr.bf16.mxu0 %v2109_v27 }
  0xb0   :  { %1876 = vmatpush3.bf16.msra.mxu0 %v2025_v35 }
  0xb1   :  { %1877 = vmatprep.subr.bf16.mxu0 %v2109_v27 }
  0xb4   :  { %1878 = vmatpush3.bf16.msra.mxu0 %v2026_v36 }
  0xb5   :  { %1879 = vmatprep.subr.bf16.mxu0 %v2109_v27 }
  0xb8   :  { %1880 = vmatpush3.bf16.msra.mxu0 %v2027_v39 }
  0xb9   :  { %1881 = vmatprep.subr.bf16.mxu0 %v2109_v27 }
  0xbc   :  { %1882 = vmatpush3.bf16.msra.mxu0 %v1163_v42 }
  0xbf   :  { %1884 = vmatmul.mubr.msk.bf16.vlgmr.msra.gmra.mrb[16].mxu0 %vm1154_vm3, %v75_v44 }
 0x11a   :  { %v1704_v45 = vpop.f32.mrb[0].mxu0 }
 0x11b   :  { %v1705_v47 = vpop.f32.mrb[1].mxu0 }
 0x11c   :  { %v1706_v48 = vadd.f32 %v1705_v47, %v1704_v45  ;;  %v1707_v49 = vpop.f32.mrb[2].mxu0  ;;  %v1726_v50 = vpop.f32.mrb[0].mxu1 }
 0x11d   :  { %v1708_v51 = vpop.f32.mrb[3].mxu0  ;;  %v1727_v53 = vpop.f32.mrb[1].mxu1 }
 0x11e   :  { %v1200_v52 = vadd.f32 %v1706_v48, %v1552_v46  ;;  %v1728_v54 = vadd.f32 %v1727_v53, %v1726_v50  ;;  %v1729_v55 = vpop.f32.mrb[2].mxu1 }
 0x11f   :  { %v1730_v56 = vpop.f32.mrb[3].mxu1 }
 0x120   :  { %v1240_v57 = vadd.f32 %v1728_v54, %v1200_v52 }
 0x13a   :  { %v1748_v58 = vpop.f32.mrb[4].mxu0 }
 0x13b   :  { %v1749_v59 = vpop.f32.mrb[5].mxu0 }
 0x13c   :  { %v1750_v60 = vadd.f32 %v1749_v59, %v1748_v58  ;;  %v1751_v61 = vpop.f32.mrb[6].mxu0  ;;  %v1770_v62 = vpop.f32.mrb[4].mxu1 }
 0x13d   :  { %v1752_v63 = vpop.f32.mrb[7].mxu0  ;;  %v1771_v1 = vpop.f32.mrb[5].mxu1 }
 0x13e   :  { %v1280_v0 = vadd.f32 %v1750_v60, %v1240_v57  ;;  %v1772_v2 = vadd.f32 %v1771_v1, %v1770_v62  ;;  %v1773_v3 = vpop.f32.mrb[6].mxu1 }
 0x13f   :  { %v1774_v4 = vpop.f32.mrb[7].mxu1 }
 0x140   :  { %v1320_v5 = vadd.f32 %v1772_v2, %v1280_v0 }
 0x15a   :  { %v1792_v6 = vpop.f32.mrb[8].mxu0 }
 0x15b   :  { %v1793_v7 = vpop.f32.mrb[9].mxu0 }
 0x15c   :  { %v1794_v8 = vadd.f32 %v1793_v7, %v1792_v6  ;;  %v1795_v9 = vpop.f32.mrb[10].mxu0  ;;  %v1814_v10 = vpop.f32.mrb[8].mxu1 }
 0x15d   :  { %v1796_v11 = vpop.f32.mrb[11].mxu0  ;;  %v1815_v12 = vpop.f32.mrb[9].mxu1 }
 0x15e   :  { %v1360_v13 = vadd.f32 %v1794_v8, %v1320_v5  ;;  %v1816_v14 = vadd.f32 %v1815_v12, %v1814_v10  ;;  %v1817_v15 = vpop.f32.mrb[10].mxu1 }
 0x15f   :  { %v1818_v16 = vpop.f32.mrb[11].mxu1 }
 0x160   :  { %v1400_v17 = vadd.f32 %v1816_v14, %v1360_v13 }
 0x17a   :  { %v1836_v18 = vpop.f32.mrb[12].mxu0 }
 0x17b   :  { %v1837_v19 = vpop.f32.mrb[13].mxu0 }
 0x17c   :  { %v1838_v20 = vadd.f32 %v1837_v19, %v1836_v18  ;;  %v1839_v21 = vpop.f32.mrb[14].mxu0  ;;  %v1858_v22 = vpop.f32.mrb[12].mxu1 }
 0x17d   :  { %v1840_v23 = vpop.f32.mrb[15].mxu0  ;;  %v1859_v24 = vpop.f32.mrb[13].mxu1 }
 0x17e   :  { %v1440_v25 = vadd.f32 %v1838_v20, %v1400_v17  ;;  %v1860_v26 = vadd.f32 %v1859_v24, %v1858_v22  ;;  %v1861_v27 = vpop.f32.mrb[14].mxu1 }
 0x17f   :  { %v1862_v28 = vpop.f32.mrb[15].mxu1 }
 0x180   :  { %v1480_v29 = vadd.f32 %v1860_v26, %v1440_v25 }
 0x192   :  { %v1519_v30 = vpop.f32.mrb[16].mxu0 }
 0x193   :  { %v1520_v31 = vadd.f32 %v1519_v30, %v1480_v29  ;;  %v1885_v32 = vpop.f32.mrb[17].mxu0 }
 0x194   :  { %v1522_v33 = vpop.f32.mrb[18].mxu0 }
 0x195   :  { %v1886_v34 = vpop.f32.mrb[19].mxu0  ;;  %1525 = vmax.xlane.f32.xlu0 %v1520_v31 }
 0x222   :  { %v1526_v35 = vpop.xlane.xlu0 %1525 }
 0x223   :  { %v1527_v36 = vsub.f32 %v1520_v31, %v1526_v35 }
 0x225   :  { %v1528_v37 = vmul.f32 1.442695, %v1527_v36 }
 0x227   :  { %2029 = vpow2.f32 %v1528_v37 }
 0x231   :  { %v2030_v38 = vpop.eup %2029 }
 0x232   :  { %1530 = vadd.xlane.f32.xlu0 %v2030_v38 }
 0x2bf   :  { %v1531_v39 = vpop.xlane.xlu0 %1530 }
 0x2c0   :  { %2031 = vlog2.f32 %v1531_v39 }
 0x2ca   :  { %v2032_v40 = vpop.eup %2031 }
 0x2cb   :  { %v1533_v41 = vmul.f32 0.6931472, %v2032_v40 }
 0x2cd   :  { %v1534_v42 = vsub.f32 %v1527_v36, %v1533_v41 }
 0x2cf   :  { %1535 = vst [vmem:[#allocation7] sm:$0xff] %v1534_v42 }
 0x2d0   :  { %2088 = shalt.err (!%p2085_p6)
}
 0x2d1   :  { %s2089_s15 = scalar_lea.hbm %s2182_s3, 128 }
 0x2d2   :  { %p2090_p7 = scmp.ne.s32.totalorder %s2182_s3, %s2089_s15  ;;  %p2093_p8 = scmp.lt.u32.totalorder %s2089_s15, %s2182_s3 }
 0x2d4   :  { %p2095_p9 = pnand %p2093_p8, %p2090_p7 }
 0x2d6   :  { %2098 = shalt.err (!%p2095_p9)
}
 0x2d7   :  { %1545 = dma.vmem_to_hbm [thread:$0]  %s1543_s11, 128, %s2182_s3, [#allocation4]  }
 0x2d8   :  { %2103 = dma.done.wait [#allocation4], 128  }
 0x2d9   :  { %2104 = vsyncadd [#allocation4], 4294967168 }
 0x2da   :  { %1549 = vsyncpa [#allocation3], 1 }
 0x2db   :  { %1550 = vsyncpa [#allocation6], 1 }
 0x2dc   :  { %1551 = vsyncpa [#allocation4], 1 }

</bundles_post_ra>
